<compile_context>
chip_gen: v6e
topology: v6e:2x2x1
jax: 0.10.0
libtpu: 0.0.40
codegen_flags: <defaults>
</compile_context>

<pallas_src>
import functools

import jax
import jax.numpy as jnp
from jax.experimental import pallas as pl
from jax.experimental.pallas import tpu as pltpu


# ----------------------------------------------------------------------------
# Glue: 1-D bilinear interpolation matrix (PyTorch align_corners=False:
# src = (dst + 0.5) * in/out - 0.5, clamped below at 0).
# ----------------------------------------------------------------------------
def make_interp_matrix(out_size: int, in_size: int, dtype=jnp.float32) -> jnp.ndarray:
    scale = in_size / out_size
    o = jnp.arange(out_size, dtype=jnp.float32)
    src = jnp.maximum((o + 0.5) * scale - 0.5, 0.0)
    i0 = jnp.clip(jnp.floor(src).astype(jnp.int32), 0, in_size - 1)
    i1 = jnp.minimum(i0 + 1, in_size - 1)
    lam1 = src - i0.astype(jnp.float32)
    lam0 = 1.0 - lam1
    w = jnp.zeros((out_size, in_size), dtype=jnp.float32)
    rows = jnp.arange(out_size)
    w = w.at[rows, i0].add(lam0)
    w = w.at[rows, i1].add(lam1)
    return w.astype(dtype)


# ----------------------------------------------------------------------------
# Per-generation VMEM sizing.
# ----------------------------------------------------------------------------
def _vmem_config():
    """Returns (block_byte_budget, vmem_limit_bytes) for the local TPU gen."""
    kind = ""
    try:
        kind = jax.devices()[0].device_kind.lower()
    except Exception:
        pass
    if "v2" in kind or "v3" in kind:
        return 6 << 20, 14 << 20
    if "v4" in kind or "v5" in kind or "v6" in kind:
        # 128 MiB physical VMEM per core; scoped default is only 16-32 MiB.
        return 48 << 20, 100 << 20
    # v7x (64 MiB physical per TC) and unknown generations: conservative.
    return 20 << 20, 48 << 20


def _choose_plane_batch(nc, h, w, h_out, w_out, in_isz, w_isz, out_isz, budget):
    """Number of (H, W) planes handled per grid step, sized for VMEM."""
    per_plane = (
        2 * (h * w * in_isz + h_out * w_out * out_isz)   # double-buffered in/out blocks
        + h_out * w * 4                                  # f32 intermediate (B, H_out, W)
        + h_out * w_out * 4                              # f32 result before final cast
        + (h_out * h + w * w_out) * w_isz                # broadcast weight copies
    )
    fixed = 2 * (h_out * h + w * w_out) * w_isz          # weight input blocks
    b = max(1, int((budget - fixed) // max(per_plane, 1)))
    b = min(b, 64)                      # bound batched-matmul unrolling / compile time
    if nc > 1:
        b = min(b, pl.cdiv(nc, 2))      # keep >= 2 grid steps (v7x megacore sharding)
    return max(1, min(b, nc))


# ----------------------------------------------------------------------------
# Pallas kernel: B planes per grid step.
#   out[b] = Wh @ x[b] @ Ww^T   via two batched MXU contractions.
# ----------------------------------------------------------------------------
def _upsample_kernel(x_ref, wh_ref, wwt_ref, o_ref):
    bsz = x_ref.shape[0]
    x = x_ref[...]                                       # (B, H_in,  W_in)
    wh = wh_ref[...]                                     # (H_out, H_in)
    wwt = wwt_ref[...]                                   # (W_in,  W_out)

    wh_b = jnp.broadcast_to(wh, (bsz,) + wh.shape)       # (B, H_out, H_in)
    wwt_b = jnp.broadcast_to(wwt, (bsz,) + wwt.shape)    # (B, W_in,  W_out)

    # H interpolation: (B, H_out, W_in), accumulate in f32 on the MXU.
    tmp = jnp.einsum("boh,bhw->bow", wh_b, x, preferred_element_type=jnp.float32)
    tmp = tmp.astype(wwt.dtype)          # bf16 path keeps intermediate narrow; f32 is a no-op
    # W interpolation: (B, H_out, W_out)
    out = jnp.einsum("bow,bwp->bop", tmp, wwt_b, preferred_element_type=jnp.float32)
    o_ref[...] = out.astype(o_ref.dtype)


# ----------------------------------------------------------------------------
# Wrapper.
# ----------------------------------------------------------------------------
@functools.partial(jax.jit, static_argnames=("factor",))
def upsample_bilinear(x: jnp.ndarray, factor: int = 2) -> jnp.ndarray:
    """x: (N, C, H, W) float -> (N, C, H*factor, W*factor)."""
    n, c, h, w = x.shape
    h_out, w_out = h * factor, w * factor
    nc = n * c

    # bf16 inputs -> bf16 weights/intermediate (f32 accumulation); else f32.
    wdtype = jnp.bfloat16 if x.dtype == jnp.bfloat16 else jnp.float32
    wh = make_interp_matrix(h_out, h, wdtype)            # (H_out, H_in)
    wwt = make_interp_matrix(w_out, w, wdtype).T         # (W_in,  W_out)

    budget, vmem_limit = _vmem_config()
    bsz = _choose_plane_batch(
        nc, h, w, h_out, w_out,
        in_isz=x.dtype.itemsize, w_isz=jnp.dtype(wdtype).itemsize,
        out_isz=x.dtype.itemsize, budget=budget)

    nc_pad = pl.cdiv(nc, bsz) * bsz
    x_flat = x.reshape(nc, h, w)
    if nc_pad != nc:
        x_flat = jnp.pad(x_flat, ((0, nc_pad - nc), (0, 0), (0, 0)))

    out_flat = pl.pallas_call(
        _upsample_kernel,
        out_shape=jax.ShapeDtypeStruct((nc_pad, h_out, w_out), x.dtype),
        grid_spec=pltpu.PrefetchScalarGridSpec(
            num_scalar_prefetch=0,
            grid=(nc_pad // bsz,),
            in_specs=[
                pl.BlockSpec((bsz, h, w), lambda i: (i, 0, 0)),
                pl.BlockSpec((h_out, h), lambda i: (0, 0)),
                pl.BlockSpec((w, w_out), lambda i: (0, 0)),
            ],
            out_specs=pl.BlockSpec((bsz, h_out, w_out), lambda i: (i, 0, 0)),
        ),
        compiler_params=pltpu.CompilerParams(
            dimension_semantics=("parallel",),
            vmem_limit_bytes=vmem_limit,
        ),
    )(x_flat, wh, wwt)

    return out_flat[:nc].reshape(n, c, h_out, w_out)


# ----------------------------------------------------------------------------
# Pure-JAX reference (same math) for a sanity check.
# ----------------------------------------------------------------------------
def upsample_bilinear_ref(x: jnp.ndarray, factor: int = 2) -> jnp.ndarray:
    n, c, h, w = x.shape
    wh = make_interp_matrix(h * factor, h)
    ww = make_interp_matrix(w * factor, w)
    out = jnp.einsum("oh,nchw,pw->ncop", wh, x.astype(jnp.float32), ww)
    return out.astype(x.dtype)


if __name__ == "__main__":
    key = jax.random.PRNGKey(0)
    x = jax.random.normal(key, (2, 4, 16, 16), dtype=jnp.float32)

    out = upsample_bilinear(x, factor=2)
    out = jax.block_until_ready(out)

    ref = upsample_bilinear_ref(x, factor=2)
    assert out.shape == (2, 4, 32, 32), out.shape
    assert jnp.allclose(out, ref, atol=1e-5, rtol=1e-5), "mismatch vs reference"

    print("KERNEL_OK")
</pallas_src>

<mosaic_0001>
module attributes {stable_mosaic.version = 11 : i64} {
  func.func private @main(%arg0: i32) attributes {dimension_semantics = [#tpu.dimension_semantics<core_parallel>], iteration_bounds = array<i64: 2>, tpu.core_type = #tpu.core_type<sc_scalar_subcore>, window_params = []} {
    return
  }
}

module attributes {stable_mosaic.version = 11 : i64} {
  func.func private @main(%arg0: i32) attributes {dimension_semantics = [#tpu.dimension_semantics<core_parallel>], iteration_bounds = array<i64: 2>, tpu.core_type = #tpu.core_type<sc_scalar_subcore>, window_params = []} {
    return
  }
}

module attributes {stable_mosaic.version = 11 : i64} {
  func.func @_upsample_kernel(%arg0: i32, %arg1: memref<4x16x16xf32, #tpu.memory_space<vmem>>, %arg2: memref<32x16xf32, #tpu.memory_space<vmem>>, %arg3: memref<16x32xf32, #tpu.memory_space<vmem>>, %arg4: memref<4x32x32xf32, #tpu.memory_space<vmem>>) attributes {dimension_semantics = [#tpu.dimension_semantics<parallel>], iteration_bounds = array<i64: 2>, scalar_prefetch = 0 : i64, scratch_operands = 0 : i64, tpu.core_type = #tpu.core_type<tc>, window_params = [{transform_indices = @transform_0, window_bounds = array<i64: 4, 16, 16>}, {pipeline_mode = #tpu.pipeline_mode<synchronous>, transform_indices = @transform_1, window_bounds = array<i64: 32, 16>}, {pipeline_mode = #tpu.pipeline_mode<synchronous>, transform_indices = @transform_2, window_bounds = array<i64: 16, 32>}, {transform_indices = @transform_3, window_bounds = array<i64: 4, 32, 32>}]} {
    %c0 = arith.constant 0 : index
    %c0_0 = arith.constant 0 : index
    %c0_1 = arith.constant 0 : index
    %0 = vector.load %arg1[%c0, %c0_0, %c0_1] : memref<4x16x16xf32, #tpu.memory_space<vmem>>, vector<4x16x16xf32>
    %c0_2 = arith.constant 0 : index
    %c0_3 = arith.constant 0 : index
    %1 = vector.load %arg2[%c0_2, %c0_3] : memref<32x16xf32, #tpu.memory_space<vmem>>, vector<32x16xf32>
    %c0_4 = arith.constant 0 : index
    %c0_5 = arith.constant 0 : index
    %2 = vector.load %arg3[%c0_4, %c0_5] : memref<16x32xf32, #tpu.memory_space<vmem>>, vector<16x32xf32>
    %3 = vector.shape_cast %1 : vector<32x16xf32> to vector<1x32x16xf32>
    %4 = vector.broadcast %3 : vector<1x32x16xf32> to vector<4x32x16xf32>
    %5 = vector.shape_cast %2 : vector<16x32xf32> to vector<1x16x32xf32>
    %6 = vector.broadcast %5 : vector<1x16x32xf32> to vector<4x16x32xf32>
    "tpu.trace_start"() <{level = 10 : i32, message = "boh,bhw->bow"}> : () -> ()
    %cst = arith.constant dense<0.000000e+00> : vector<4x32x16xf32>
    %7 = tpu.matmul %4, %0, %cst {dimension_numbers = #tpu.dot_dimension_numbers<[2], [1], [1], [2], [0, 0, 0, 1, 1, 2], [0], [0]>} : vector<4x32x16xf32>, vector<4x16x16xf32>, vector<4x32x16xf32> -> vector<4x32x16xf32>
    "tpu.trace_stop"() : () -> ()
    "tpu.trace_start"() <{level = 10 : i32, message = "bow,bwp->bop"}> : () -> ()
    %cst_6 = arith.constant dense<0.000000e+00> : vector<4x32x32xf32>
    %8 = tpu.matmul %7, %6, %cst_6 {dimension_numbers = #tpu.dot_dimension_numbers<[2], [1], [1], [2], [0, 0, 0, 1, 1, 2], [0], [0]>} : vector<4x32x16xf32>, vector<4x16x32xf32>, vector<4x32x32xf32> -> vector<4x32x32xf32>
    "tpu.trace_stop"() : () -> ()
    %c0_7 = arith.constant 0 : index
    %c0_8 = arith.constant 0 : index
    %c0_9 = arith.constant 0 : index
    %9 = vector.load %arg4[%c0_7, %c0_8, %c0_9] : memref<4x32x32xf32, #tpu.memory_space<vmem>>, vector<4x32x32xf32>
    tpu.vector_store %arg4[%c0_7, %c0_8, %c0_9], %8 {strides = array<i32>} : memref<4x32x32xf32, #tpu.memory_space<vmem>>, vector<4x32x32xf32>,
    return
  }
  func.func @transform_0(%arg0: i32) -> (i32, i32, i32) {
    %c0_i32 = arith.constant 0 : i32
    %c0_i32_0 = arith.constant 0 : i32
    %c0_i32_1 = arith.constant 0 : i32
    return %arg0, %c0_i32, %c0_i32_0 : i32, i32, i32
  }
  func.func @transform_1(%arg0: i32) -> (i32, i32) {
    %c0_i32 = arith.constant 0 : i32
    %c0_i32_0 = arith.constant 0 : i32
    %c0_i32_1 = arith.constant 0 : i32
    return %c0_i32, %c0_i32_0 : i32, i32
  }
  func.func @transform_2(%arg0: i32) -> (i32, i32) {
    %c0_i32 = arith.constant 0 : i32
    %c0_i32_0 = arith.constant 0 : i32
    %c0_i32_1 = arith.constant 0 : i32
    return %c0_i32, %c0_i32_0 : i32, i32
  }
  func.func @transform_3(%arg0: i32) -> (i32, i32, i32) {
    %c0_i32 = arith.constant 0 : i32
    %c0_i32_0 = arith.constant 0 : i32
    %c0_i32_1 = arith.constant 0 : i32
    return %arg0, %c0_i32, %c0_i32_0 : i32, i32, i32
  }
}

</mosaic_0001>

<bundles_post_ra>
// kernel: upsample_bilinear.1
= control target key start
LH: loop header
LB: loop body
LE: loop exit
PB: predicated region body
PF: predicated region fallthrough
CT: control target
= control target key end

     0   :  { %8 = vsyncpa [#allocation3], 0  ;;  %s1517_s0 = inlined_call_operand.vmem [shape: f32[8,16,16], index: 0, kind: input, shape index: {}]   ;;  %s1518_s1 = inlined_call_operand.vmem [shape: f32[32,16], index: 1, kind: input, shape index: {}]   ;;  %s1519_s2 = inlined_call_operand.vmem [shape: f32[16,32], index: 2, kind: input, shape index: {}]   ;;  %s1520_s3 = inlined_call_operand.hbm [shape: f32[8,32,32], index: 3, kind: output, shape index: {}]  }
   0x1   :  { %10 = vsyncpa [#allocation3 + $0x1], 0  ;;  %s1327_s12 = smov 0   ;;  %s1329_s13 = smov 0  }
   0x2   :  { %s1331_s14 = smov 0   ;;  %s1333_s15 = smov 0  }
   0x3 LB: > { %s1348_s16 = sadd.s32 4294967295, %s1302_s15   ;;  %s1024_s17 = sadd.s32 4294967294, %s1302_s15   ;;  %s1302_s15 = sphi %s1333_s15, %s1526_s15   ;;  %s1298_s14 = sphi %s1331_s14, %s1525_s14   ;;  %s1294_s13 = sphi %s1329_s13, %s1524_s13   ;;  %s1290_s12 = sphi %s1327_s12, %s1523_s12  }
   0x4   : > { %s1352_s18 = sadd.s32 1, %s1302_s15   ;;  %s91_s19 = sadd.s32 1, %s1298_s14 }
   0x5   : > { %s88_s20 = ssub.s32 %s1302_s15, %s1352_s18  ;;  %p101_p0 = scmp.ne.s32.totalorder %s1298_s14, %s1294_s13 }
   0x6   : > { %p89_p1 = scmp.eq.s32.totalorder %s88_s20, 0  ;;  %p102_p2 = scmp.eq.s32.totalorder %s1348_s16, 1 }
   0x7   : > { %p107_p3 = scmp.ne.s32.totalorder %s1294_s13, %s1290_s12  ;;  %p108_p4 = scmp.eq.s32.totalorder %s1024_s17, 1 }
   0x8   : > { %s1363_s21 = scalar_select %p89_p1, %s1298_s14, %s91_s19  }
   0x9   : > { %p1365_p5 = por %p102_p2, %p101_p0  ;;  %p1369_p6 = por %p108_p4, %p107_p3 }
   0xa   : > { %p1027_p7 = scmp.ge.s32.totalorder %s1302_s15, 1  ;;  %p142_p8 = scmp.lt.s32.totalorder %s1302_s15, 3 }
   0xc   : > { %p143_p9 = pnand %p1027_p7, %p142_p8 }
   0xd   : > { %s1029_s24 = sshll.u32 (!%p143_p9), %s1348_s16, 2  ;;  %s164_s20 = sand.u32 (!%p143_p9), 1, %s1294_s13  }
   0xe   : > { %146 = sbr.rel (%p143_p9) target bundleno = 444 (0x1bc), region = 32  ;;  %p168_p10 = scmp.lt.s32.totalorder (!%p143_p9), %s1029_s24, 7 }
   0xf   : > { %s1072_s26 = sshll.u32 (!%p143_p9), %s1348_s16, 11  ;;  %s1477_s16 = scalar_lea.sflag (!%p143_p9), [#allocation3], %s164_s20 }
  0x10   : > { %s1304_s5 = smov (!%p143_p9), [#allocation2]  }
  0x11   : > { %s1246_s6 = sshll.u32 (!%p143_p9), %s1304_s5, 4  ;;  %s1247_s6 = int_to_ptr.vmem [resolvable:$false] %s1246_s6 }
  0x12   : > { %s1248_s7 = scalar_lea.vmem (!%p143_p9), %s1247_s6, 4096 }
  0x13   : > { %v183_v0 = vld [vmem:[%s1518_s1] sm:$0xff]  ;;  %vm189_vm0 = vcmask 130048   ;;  %s1528_s24 = smov (!%p168_p10, %s1029_s24), 7  ;;  %v184_v5 = vld [vmem:[%s1518_s1 + $0x8] sm:$0xff]  ;;  %v185_v8 = vld [vmem:[%s1518_s1 + $0x10] sm:$0xff]  ;;  %vm930_vm1 = vcmask 261120  }
  0x14   : > { %1125 = vmatprep.mubr.msk.f32.mxu0 %vm189_vm0, %v183_v0  ;;  %1135 = vmatprep.mubr.msk.f32.mxu1 %vm189_vm0, %v183_v0  ;;  %s1070_s27 = sshll.u32 %s1528_s24, 4  ;;  %v186_v9 = vld [vmem:[%s1518_s1 + $0x18] sm:$0xff]  ;;  %v188_v12 = vld [vmem:[%s1519_s2 + $0x8] sm:$0xff]  ;;  %v187_v13 = vld [vmem:[%s1519_s2] sm:$0xff]  ;;  %s1028_s24 = sshll.u32 %s164_s20, 7 }
  0x15   : > { %s172_s30 = scalar_lea.vmem %s1517_s0, %s1070_s27  ;;  %s1432_s25 = scalar_lea.vmem [#allocation2], %s1028_s24 }
  0x16   : > { %v176_v1 = vld [vmem:[%s172_s30 + $0x8] sm:$0xff]  ;;  %v178_v2 = vld [vmem:[%s172_s30 + $0x18] sm:$0xff]  ;;  %v175_v3 = vld [vmem:[%s172_s30] sm:$0xff]  ;;  %s962_s27 = sshll.u32 %s1432_s25, 4  ;;  %s1465_s27 = int_to_ptr.vmem [resolvable:$true] %s962_s27 }
  0x17   : > { %1121 = vmatprep.subr.mxu0 %v176_v1  ;;  %1131 = vmatprep.subr.mxu1 %v178_v2  ;;  %v177_v4 = vld [vmem:[%s172_s30 + $0x10] sm:$0xff]  ;;  %v180_v6 = vld [vmem:[%s172_s30 + $0x28] sm:$0xff]  ;;  %v182_v7 = vld [vmem:[%s172_s30 + $0x38] sm:$0xff]  ;;  %s1242_s4 = scalar_lea.vmem %s1465_s27, 2048  ;;  %p1249_p0 = scmp.lt.s32.totalorder %s1465_s27, %s1247_s6 }
  0x18   : > { %1122 = vmatpush3.msra.mxu0 %v176_v1  ;;  %1132 = vmatpush3.msra.mxu1 %v178_v2  ;;  %v179_v10 = vld [vmem:[%s172_s30 + $0x20] sm:$0xff]  ;;  %v181_v11 = vld [vmem:[%s172_s30 + $0x30] sm:$0xff]  ;;  %s1463_s30 = scalar_lea.hbm %s1520_s3, %s1072_s26  ;;  %p1243_p11 = scmp.ne.s32.totalorder %s1465_s27, %s1242_s4 }
  0x19   : > { %1123 = vmatprep.subr.mxu0 %v175_v3  ;;  %1133 = vmatprep.subr.mxu1 %v177_v4  ;;  %p1250_p1 = scmp.lt.s32.totalorder %s1248_s7, %s1242_s4 }
  0x1a   : > { %1124 = vmatpush3.msra.mxu0 %v175_v3  ;;  %1134 = vmatpush3.msra.mxu1 %v177_v4  ;;  %p1244_p12 = pnand %p1243_p11, %p1365_p5 }
  0x1b   : > { %1126 = vmatmul.mubr.msk.f32.vlgmr.msra.gmra.mxu0 %vm189_vm0, %v184_v5  ;;  %1136 = vmatmul.mubr.msk.f32.vlgmr.msra.gmra.mxu1 %vm189_vm0, %v184_v5  ;;  %p1251_p2 = por %p1250_p1, %p1249_p0 }
  0x1c   : > { %1141 = vmatprep.subr.mxu0 %v180_v6  ;;  %1151 = vmatprep.subr.mxu1 %v182_v7  ;;  %p1245_p13 = pneg %p1244_p12 }
  0x1d   : > { %1142 = vmatpush3.msra.mxu0 %v180_v6  ;;  %1152 = vmatpush3.msra.mxu1 %v182_v7 }
  0x1e   : > { %1128 = vmatprep.mubr.msk.f32.mxu0 %vm189_vm0, %v185_v8  ;;  %1138 = vmatprep.mubr.msk.f32.mxu1 %vm189_vm0, %v185_v8  ;;  %p1252_p3 = pnand %p1251_p2, %p1245_p13 }
  0x1f   : > { %1129 = vmatmul.mubr.msk.f32.gmra.mxu0 %vm189_vm0, %v186_v9  ;;  %1139 = vmatmul.mubr.msk.f32.gmra.mxu1 %vm189_vm0, %v186_v9 }
  0x20   : > { %1143 = vmatprep.subr.mxu0 %v179_v10  ;;  %1153 = vmatprep.subr.mxu1 %v181_v11 }
  0x21   : > { %1144 = vmatpush3.msra.mxu0 %v179_v10  ;;  %1154 = vmatpush3.msra.mxu1 %v181_v11 }
  0x22   : > { %1145 = vmatprep.mubr.msk.f32.mxu0 %vm189_vm0, %v183_v0  ;;  %1155 = vmatprep.mubr.msk.f32.mxu1 %vm189_vm0, %v183_v0 }
  0x23   : > { %1146 = vmatmul.mubr.msk.f32.vlgmr.msra.gmra.mxu0 %vm189_vm0, %v184_v5  ;;  %1156 = vmatmul.mubr.msk.f32.vlgmr.msra.gmra.mxu1 %vm189_vm0, %v184_v5 }
  0x24   : > { %1148 = vmatprep.mubr.msk.f32.mxu0 %vm189_vm0, %v185_v8  ;;  %1158 = vmatprep.mubr.msk.f32.mxu1 %vm189_vm0, %v185_v8 }
  0x25   : > { %1161 = vmatprep.subr.mxu0 %v188_v12  ;;  %1171 = vmatprep.subr.mxu1 %v188_v12 }
  0x26   : > { %1162 = vmatpush3.msra.mxu0 %v188_v12  ;;  %1172 = vmatpush3.msra.mxu1 %v188_v12 }
  0x27   : > { %1149 = vmatmul.mubr.msk.f32.gmra.mxu0 %vm189_vm0, %v186_v9  ;;  %1159 = vmatmul.mubr.msk.f32.gmra.mxu1 %vm189_vm0, %v186_v9 }
  0x28   : > { %1163 = vmatprep.subr.mxu0 %v187_v13  ;;  %1173 = vmatprep.subr.mxu1 %v187_v13 }
  0x29   : > { %1164 = vmatpush3.msra.mxu0 %v187_v13  ;;  %1174 = vmatpush3.msra.mxu1 %v187_v13 }
  0x2a   : > { %1181 = vmatprep.subr.mxu0 %v188_v12  ;;  %1191 = vmatprep.subr.mxu1 %v188_v12 }
  0xdb   : > { %v1127_v14 = vpop.f32.mrf.mxu0  ;;  %v1137_v15 = vpop.f32.mrf.mxu1 }
  0xdd   : > { %v268_v16 = vpop.f32.mrf.mxu0  ;;  %v353_v17 = vpop.f32.mrf.mxu1 }
  0xde   : > { %1165 = vmatprep.mubr.msk.f32.mxu0 %vm189_vm0, %v268_v16  ;;  %1175 = vmatprep.mubr.msk.f32.mxu1 %vm189_vm0, %v353_v17 }
  0xdf   : > { %v1130_v18 = vpop.f32.mrf.mxu0  ;;  %v1140_v19 = vpop.f32.mrf.mxu1  ;;  %1166 = vmatmul.mubr.msk.f32.vlgmr.msra.gmra.mxu0 %vm189_vm0, %v1127_v14  ;;  %1176 = vmatmul.mubr.msk.f32.vlgmr.msra.gmra.mxu1 %vm189_vm0, %v1137_v15 }
  0xe0   : > { %1182 = vmatpush3.msra.mxu0 %v188_v12  ;;  %1192 = vmatpush3.msra.mxu1 %v188_v12 }
  0xe1   : > { %v278_v20 = vpop.f32.mrf.mxu0  ;;  %v363_v21 = vpop.f32.mrf.mxu1  ;;  %1183 = vmatprep.subr.mxu0 %v187_v13  ;;  %1193 = vmatprep.subr.mxu1 %v187_v13 }
  0xe2   : > { %1168 = vmatprep.mubr.msk.f32.mxu0 %vm189_vm0, %v278_v20  ;;  %1178 = vmatprep.mubr.msk.f32.mxu1 %vm189_vm0, %v363_v21 }
  0xe3   : > { %v1147_v22 = vpop.f32.mrf.mxu0  ;;  %v1157_v23 = vpop.f32.mrf.mxu1  ;;  %1169 = vmatmul.mubr.msk.f32.gmra.mxu0 %vm189_vm0, %v1130_v18  ;;  %1179 = vmatmul.mubr.msk.f32.gmra.mxu1 %vm189_vm0, %v1140_v19 }
  0xe4   : > { %1184 = vmatpush3.msra.mxu0 %v187_v13  ;;  %1194 = vmatpush3.msra.mxu1 %v187_v13 }
  0xe5   : > { %v438_v24 = vpop.f32.mrf.mxu0  ;;  %v523_v25 = vpop.f32.mrf.mxu1 }
  0xe6   : > { %1185 = vmatprep.mubr.msk.f32.mxu0 %vm189_vm0, %v438_v24  ;;  %1195 = vmatprep.mubr.msk.f32.mxu1 %vm189_vm0, %v523_v25 }
  0xe7   : > { %v1150_v26 = vpop.f32.mrf.mxu0  ;;  %v1160_v27 = vpop.f32.mrf.mxu1  ;;  %1186 = vmatmul.mubr.msk.f32.vlgmr.msra.gmra.mxu0 %vm189_vm0, %v1147_v22  ;;  %1196 = vmatmul.mubr.msk.f32.vlgmr.msra.gmra.mxu1 %vm189_vm0, %v1157_v23 }
  0xe9   : > { %v448_v28 = vpop.f32.mrf.mxu0  ;;  %v533_v29 = vpop.f32.mrf.mxu1 }
  0xea   : > { %1188 = vmatprep.mubr.msk.f32.mxu0 %vm189_vm0, %v448_v28  ;;  %1198 = vmatprep.mubr.msk.f32.mxu1 %vm189_vm0, %v533_v29 }
  0xeb   : > { %1189 = vmatmul.mubr.msk.f32.gmra.mxu0 %vm189_vm0, %v1150_v26  ;;  %1199 = vmatmul.mubr.msk.f32.gmra.mxu1 %vm189_vm0, %v1160_v27 }
 0x19f   : > { %v1167_v30 = vpop.f32.mrf.mxu0  ;;  %v1177_v31 = vpop.f32.mrf.mxu1 }
 0x1a0   : > { %932 = vst.msk [vmem:[%s1432_s25 + $0x8] sm:$0xff] %vm930_vm1, %v1167_v30  ;;  %936 = vst.msk [vmem:[%s1432_s25 + $0x28] sm:$0xff] %vm930_vm1, %v1177_v31 }
 0x1a1   : > { %v620_v32 = vpop.f32.mrf.mxu0  ;;  %v717_v33 = vpop.f32.mrf.mxu1 }
 0x1a2   : > { %931 = vst.msk [vmem:[%s1432_s25] sm:$0xff] %vm930_vm1, %v620_v32  ;;  %935 = vst.msk [vmem:[%s1432_s25 + $0x20] sm:$0xff] %vm930_vm1, %v717_v33 }
 0x1a3   : > { %v1170_v34 = vpop.f32.mrf.mxu0  ;;  %v1180_v35 = vpop.f32.mrf.mxu1 }
 0x1a4   : > { %934 = vst.msk [vmem:[%s1432_s25 + $0x18] sm:$0xff] %vm930_vm1, %v1170_v34  ;;  %938 = vst.msk [vmem:[%s1432_s25 + $0x38] sm:$0xff] %vm930_vm1, %v1180_v35 }
 0x1a5   : > { %v630_v36 = vpop.f32.mrf.mxu0  ;;  %v727_v37 = vpop.f32.mrf.mxu1 }
 0x1a6   : > { %933 = vst.msk [vmem:[%s1432_s25 + $0x10] sm:$0xff] %vm930_vm1, %v630_v36  ;;  %937 = vst.msk [vmem:[%s1432_s25 + $0x30] sm:$0xff] %vm930_vm1, %v727_v37 }
 0x1a7   : > { %v1187_v38 = vpop.f32.mrf.mxu0  ;;  %v1197_v39 = vpop.f32.mrf.mxu1 }
 0x1a8   : > { %940 = vst.msk [vmem:[%s1432_s25 + $0x48] sm:$0xff] %vm930_vm1, %v1187_v38  ;;  %944 = vst.msk [vmem:[%s1432_s25 + $0x68] sm:$0xff] %vm930_vm1, %v1197_v39 }
 0x1a9   : > { %v814_v40 = vpop.f32.mrf.mxu0  ;;  %v911_v41 = vpop.f32.mrf.mxu1 }
 0x1aa   : > { %939 = vst.msk [vmem:[%s1432_s25 + $0x40] sm:$0xff] %vm930_vm1, %v814_v40  ;;  %943 = vst.msk [vmem:[%s1432_s25 + $0x60] sm:$0xff] %vm930_vm1, %v911_v41 }
 0x1ab   : > { %v1190_v42 = vpop.f32.mrf.mxu0  ;;  %v1200_v43 = vpop.f32.mrf.mxu1 }
 0x1ac   : > { %942 = vst.msk [vmem:[%s1432_s25 + $0x58] sm:$0xff] %vm930_vm1, %v1190_v42  ;;  %946 = vst.msk [vmem:[%s1432_s25 + $0x78] sm:$0xff] %vm930_vm1, %v1200_v43 }
 0x1ad   : > { %v824_v44 = vpop.f32.mrf.mxu0  ;;  %v921_v45 = vpop.f32.mrf.mxu1 }
 0x1ae   : > { %941 = vst.msk [vmem:[%s1432_s25 + $0x50] sm:$0xff] %vm930_vm1, %v824_v44  ;;  %945 = vst.msk [vmem:[%s1432_s25 + $0x70] sm:$0xff] %vm930_vm1, %v921_v45 }
 0x1af   : > { %1255 = shalt.err (!%p1252_p3)
}
 0x1b0   : > { %s1256_s8 = scalar_lea.hbm %s1463_s30, 2048  ;;  %s1260_s11 = scalar_lea.hbm %s1520_s3, 4096 }
 0x1b1   : > { %p1257_p4 = scmp.ne.s32.totalorder %s1463_s30, %s1256_s8  ;;  %p1261_p9 = scmp.lt.s32.totalorder %s1463_s30, %s1520_s3 }
 0x1b2   : > { %p1262_p10 = scmp.lt.s32.totalorder %s1260_s11, %s1256_s8 }
 0x1b3   : > { %p1258_p7 = pnand %p1257_p4, %p1365_p5 }
 0x1b4   : > { %p1263_p11 = por %p1262_p10, %p1261_p9 }
 0x1b5   : > { %p1259_p8 = pneg %p1258_p7 }
 0x1b7   : > { %p1264_p12 = pnand %p1263_p11, %p1259_p8 }
 0x1b9   : > { %1267 = shalt.err (!%p1264_p12)
}
 0x1ba   : > { %s1305_s20 = smov 128   ;;  %s1306_s24 = smov 8  }
 0x1bb   : > { %1201 = dma.vmem_to_hbm [thread:$0]  (%p1365_p5), %s1465_s27, 2048, %s1463_s30, %s1477_s16, %s1305_s20, %s1305_s20, %s1306_s24  }
 0x1bc PF: > { %p1207_p13 = scmp.ge.s32.totalorder %s1302_s15, 2  ;;  %s977_s25 = sand.u32 1, %s1290_s12  }
 0x1bd   : > { %s978_s26 = scalar_lea.sflag [#allocation3], %s977_s25 }
 0x1be   : > { %p1204_p0 = pnand %p1207_p13, %p1369_p6 }
 0x1c0   : > { %p1205_p1 = pneg %p1204_p0 }
 0x1c2   : > { %1285 = dma.done.wait (%p1205_p1), %s978_s26, 2048  }
 0x1c3   : > { %1287 = vsyncadd (%p1205_p1), %s978_s26, 4294965248  ;;  %p13_p2 = scmp.ge.s32.totalorder %s1352_s18, 4   ;;  %s1523_s12 = smov %s1294_s13 }
 0x1c4   : > { %s1524_s13 = smov %s1298_s14  ;;  %s1525_s14 = smov %s1363_s21 }
 0x1c5   : > { %s1526_s15 = smov %s1352_s18  ;;  %15 = sbr.rel (!%p13_p2) target bundleno = 3 (0x3), region = 67 }
 0x1ca   :  { %983 = vsyncpa [#allocation3], 1 }
 0x1cb   :  { %985 = vsyncpa [#allocation3 + $0x1], 1 }

</bundles_post_ra>
